<compile_context>
chip_gen: v7x
topology: tpu7x:2x2x1
jax: 0.10.0
libtpu: 0.0.40
codegen_flags: <defaults>
</compile_context>

<pallas_src>
import jax
import jax.numpy as jnp
import numpy as np
from jax.experimental import pallas as pl
from jax.experimental.pallas import tpu as pltpu

# ----------------- synthetic sizes (small, consistent with the module) -------
B = 2            # batch
V = 512          # vertices (real FLAME V=5023 also works: single full-array
                 # block satisfies the (8,128) rule and fits VMEM)
N_SHAPE = 8      # n_shape
N_EXP = 8        # n_exp
L = N_SHAPE + N_EXP          # betas dimension
NJ = 5                       # FLAME joints (global, neck, jaw, l_eye, r_eye)
P = (NJ - 1) * 9             # 36 pose blendshape basis
PARENTS = [-1, 0, 1, 1, 1]   # kintree
FACTOR = 4.0
HI = jax.lax.Precision.HIGHEST   # only for one-time folds / reference / tiny glue


# ----------------------------- fused Pallas kernel ---------------------------
def _flame_fused_kernel(lhs_ref, rhs_ref, vt_ref, a2_ref, wt_ref, out_ref):
    # --- blendshapes: ONE merged MXU matmul -----------------------------------
    # lhs = [betas | pose_feature] (B, L+P), rhs = [shapedirs ; posedirs] (L+P, 3V)
    off = jnp.dot(lhs_ref[...], rhs_ref[...], preferred_element_type=jnp.float32)
    vposed = vt_ref[...] + off                       # (B, 3V), column = c*V + v

    # --- per-vertex 4x4 transforms: tmat[r, v] = sum_j a2[r, j] * W[v, j] -----
    # K = NJ = 5 -> cheaper & full-precision as VPU outer-product FMAs.
    a2 = a2_ref[...]                                 # (B*16, NJ), row = b*16 + d*4 + c
    wt = wt_ref[...]                                 # (NJ, V)
    tmat = a2[:, 0:1] * wt[0:1, :]                   # (B*16, V)
    for j in range(1, NJ):
        tmat = tmat + a2[:, j:j + 1] * wt[j:j + 1, :]

    # --- apply transforms: full 4-sublane slabs per coefficient ---------------
    # rows 4d..4d+3 of each batch's 16-row block are the d-th coefficient for
    # output coords c = 0..3 (c = 3 is the homogeneous row, dropped on store).
    for b in range(B):
        t = tmat[16 * b:16 * b + 16, :]              # (16, V), aligned slice
        px = vposed[b:b + 1, 0:V]                    # (1, V)
        py = vposed[b:b + 1, V:2 * V]
        pz = vposed[b:b + 1, 2 * V:3 * V]
        vb = t[0:4, :] * px + t[4:8, :] * py + t[8:12, :] * pz + t[12:16, :]
        out_ref[3 * b:3 * b + 3, :] = vb[0:3, :]


def flame_fused_call(lhs, blend_cm, vt_cm, a2, wt):
    vv = wt.shape[1]
    return pl.pallas_call(
        _flame_fused_kernel,
        out_shape=jax.ShapeDtypeStruct((B * 3, vv), jnp.float32),
        grid=(1,),                                   # single block: everything in VMEM
        in_specs=[
            pl.BlockSpec(lhs.shape, lambda i: (0, 0)),
            pl.BlockSpec(blend_cm.shape, lambda i: (0, 0)),
            pl.BlockSpec(vt_cm.shape, lambda i: (0, 0)),
            pl.BlockSpec(a2.shape, lambda i: (0, 0)),
            pl.BlockSpec(wt.shape, lambda i: (0, 0)),
        ],
        out_specs=pl.BlockSpec((B * 3, vv), lambda i: (0, 0)),
        compiler_params=pltpu.CompilerParams(dimension_semantics=("arbitrary",)),
    )(lhs, blend_cm, vt_cm, a2, wt)


# ----------------------------- JAX glue (tiny, sequential) -------------------
def batch_rodrigues(rot_vecs):
    angle = jnp.linalg.norm(rot_vecs + 1e-8, axis=1, keepdims=True)
    rot_dir = rot_vecs / angle
    cos = jnp.cos(angle)[:, :, None]
    sin = jnp.sin(angle)[:, :, None]
    rx, ry, rz = rot_dir[:, 0:1], rot_dir[:, 1:2], rot_dir[:, 2:3]
    zeros = jnp.zeros_like(rx)
    K = jnp.concatenate([zeros, -rz, ry, rz, zeros, -rx, -ry, rx, zeros],
                        axis=1).reshape(-1, 3, 3)
    ident = jnp.eye(3, dtype=rot_vecs.dtype)[None]
    return ident + sin * K + (1.0 - cos) * jnp.matmul(K, K)


def batch_rigid_transform(rot_mats, joints, parents):
    # TODO(synk): Rodrigues + 5-joint kinematic-chain composition are tiny,
    # inherently sequential 3x3/4x4 math; kept in plain JAX (no Pallas benefit).
    b, nj = joints.shape[0], joints.shape[1]
    rel = joints - jnp.concatenate(
        [jnp.zeros((b, 1, 3), joints.dtype), joints[:, parents[1:]]], axis=1)
    top = jnp.concatenate([rot_mats, rel[..., None]], axis=-1)           # (b,nj,3,4)
    bottom = jnp.broadcast_to(jnp.array([0., 0., 0., 1.], joints.dtype),
                              (b, nj, 1, 4))
    tmats = jnp.concatenate([top, bottom], axis=-2)                      # (b,nj,4,4)
    chain = [tmats[:, 0]]
    for i in range(1, nj):
        chain.append(jnp.matmul(chain[parents[i]], tmats[:, i], precision=HI))
    transforms = jnp.stack(chain, axis=1)
    posed_joints = transforms[:, :, :3, 3]
    jh = jnp.concatenate([joints[..., None],
                          jnp.zeros((b, nj, 1, 1), joints.dtype)], axis=2)
    rel_tf = transforms - jnp.pad(jnp.matmul(transforms, jh, precision=HI),
                                  ((0, 0), (0, 0), (0, 0), (3, 0)))
    return posed_joints, rel_tf


# ----------------------------- forward (fused Pallas pipeline) ---------------
def flame_forward_pallas(expression_params, full_pose, model):
    b = expression_params.shape[0]
    betas = jnp.concatenate(
        [jnp.zeros((b, N_SHAPE), expression_params.dtype), expression_params],
        axis=1)

    rot_mats = batch_rodrigues(full_pose.reshape(-1, 3)).reshape(b, NJ, 3, 3)
    pose_feature = (rot_mats[:, 1:] - jnp.eye(3, dtype=rot_mats.dtype)).reshape(b, P)

    # Joints via the precomputed fold of J_regressor into the shape basis
    # (J = J_regressor @ v_shaped, mathematically identical, no kernel needed).
    joints = model["J_template"][None] + jnp.matmul(
        betas, model["J_shape_cm"], precision=HI).reshape(b, NJ, 3)

    _, A = batch_rigid_transform(rot_mats, joints, PARENTS)

    # A laid out for the kernel: row = b*16 + d*4 + c  <->  A[b, j, c, d]
    a2 = A.transpose(0, 3, 2, 1).reshape(b * 16, NJ)

    # Merged blendshape LHS: [betas | pose_feature]
    lhs = jnp.concatenate([betas, pose_feature], axis=1)                 # (B, L+P)

    out = flame_fused_call(lhs, model["blend_cm"], model["vt_cm"], a2, model["wt"])
    vertices = out.reshape(b, 3, V).transpose(0, 2, 1)                   # (B, V, 3)
    return vertices, pose_feature, A


# ----------------------------- pure-JAX reference ----------------------------
def flame_forward_reference(expression_params, full_pose, model):
    b = expression_params.shape[0]
    betas = jnp.concatenate(
        [jnp.zeros((b, N_SHAPE), expression_params.dtype), expression_params],
        axis=1)
    v_shaped = model["v_template"][None] + jnp.einsum(
        'bl,vcl->bvc', betas, model["shapedirs"], precision=HI)
    joints = jnp.einsum('jv,bvc->bjc', model["J_regressor"], v_shaped, precision=HI)
    rot_mats = batch_rodrigues(full_pose.reshape(-1, 3)).reshape(b, NJ, 3, 3)
    pose_feature = (rot_mats[:, 1:] - jnp.eye(3, dtype=rot_mats.dtype)).reshape(b, P)
    pose_offsets = jnp.matmul(pose_feature, model["posedirs"],
                              precision=HI).reshape(b, V, 3)
    v_posed = v_shaped + pose_offsets
    _, A = batch_rigid_transform(rot_mats, joints, PARENTS)
    T = jnp.einsum('vj,bjpq->bvpq', model["lbs_weights"], A, precision=HI)
    v_homo = jnp.concatenate([v_posed, jnp.ones((b, V, 1), v_posed.dtype)], axis=-1)
    verts = jnp.einsum('bvpq,bvq->bvp', T, v_homo, precision=HI)[:, :, :3]
    return verts, pose_feature, A


# ----------------------------- deterministic parameter setup -----------------
def build_model(key):
    ks = jax.random.split(key, 6)
    v_template = jax.random.normal(ks[0], (V, 3), jnp.float32) * 0.5 * FACTOR
    shapedirs = jax.random.normal(ks[1], (V, 3, L), jnp.float32) * 0.02 * FACTOR
    posedirs_vcp = jax.random.normal(ks[2], (V, 3, P), jnp.float32) * 0.02
    # PyTorch layout: reshape (V,3,P) -> (V*3, P) -> transpose -> (P, 3V) vertex-major
    posedirs = posedirs_vcp.reshape(V * 3, P).T * FACTOR
    J_regressor = jax.nn.softmax(jax.random.normal(ks[3], (NJ, V), jnp.float32), axis=-1)
    lbs_weights = jax.nn.softmax(jax.random.normal(ks[4], (V, NJ), jnp.float32) * 2.0,
                                 axis=-1)
    shape_params = jax.random.normal(ks[5], (1, N_SHAPE), jnp.float32) * 0.5

    # subject-specific shape offset baked into v_template (as in FLAME.__init__)
    v_template = v_template + jnp.einsum(
        'bl,vcl->bvc', shape_params, shapedirs[:, :, :N_SHAPE], precision=HI)[0]

    # --- static kernel layouts (one-time folds, done at HIGHEST precision) ---
    vt_cm = v_template.T.reshape(1, 3 * V)                               # col = c*V+v
    sd_cm = shapedirs.transpose(2, 1, 0).reshape(L, 3 * V)
    pd_cm = posedirs.reshape(P, V, 3).transpose(0, 2, 1).reshape(P, 3 * V)
    blend_cm = jnp.concatenate([sd_cm, pd_cm], axis=0)                   # (L+P, 3V)

    wt = lbs_weights.T                                                   # (NJ, V)

    # Joint regressor folded into template / shape basis: J = Jt + betas @ Js
    J_template = jnp.einsum('jv,vc->jc', J_regressor, v_template, precision=HI)
    J_shape = jnp.einsum('jv,vcl->jcl', J_regressor, shapedirs, precision=HI)
    J_shape_cm = J_shape.transpose(2, 0, 1).reshape(L, NJ * 3)           # (L, NJ*3)

    return dict(v_template=v_template, shapedirs=shapedirs, posedirs=posedirs,
                J_regressor=J_regressor, lbs_weights=lbs_weights,
                vt_cm=vt_cm, blend_cm=blend_cm, wt=wt,
                J_template=J_template, J_shape_cm=J_shape_cm)


if __name__ == "__main__":
    key = jax.random.PRNGKey(0)
    kmodel, kexp, kpose = jax.random.split(key, 3)
    model = build_model(kmodel)

    expression_params = jax.random.normal(kexp, (B, N_EXP), jnp.float32) * 0.3
    full_pose = jax.random.normal(kpose, (B, NJ * 3), jnp.float32) * 0.2

    forward = jax.jit(flame_forward_pallas)
    verts, pose_feature, transforms = jax.block_until_ready(
        forward(expression_params, full_pose, model))

    assert verts.shape == (B, V, 3)
    assert pose_feature.shape == (B, P)
    assert transforms.shape == (B, NJ, 4, 4)

    rverts, rpf, rA = flame_forward_reference(expression_params, full_pose, model)
    # Kernel uses default (single-pass bf16) MXU precision for the blendshape
    # matmul; reference is HIGHEST -> 5e-3 tolerance on vertices.
    np.testing.assert_allclose(np.asarray(verts), np.asarray(rverts),
                               rtol=5e-3, atol=5e-3)
    np.testing.assert_allclose(np.asarray(pose_feature), np.asarray(rpf),
                               rtol=1e-4, atol=1e-5)
    np.testing.assert_allclose(np.asarray(transforms), np.asarray(rA),
                               rtol=1e-3, atol=1e-3)

    print("KERNEL_OK")
</pallas_src>

<mosaic_0001>
module attributes {stable_mosaic.version = 11 : i64} {
  func.func @_flame_fused_kernel(%arg0: i32, %arg1: memref<2x52xf32, #tpu.memory_space<vmem>>, %arg2: memref<52x1536xf32, #tpu.memory_space<vmem>>, %arg3: memref<1x1536xf32, #tpu.memory_space<vmem>>, %arg4: memref<32x5xf32, #tpu.memory_space<vmem>>, %arg5: memref<5x512xf32, #tpu.memory_space<vmem>>, %arg6: memref<6x512xf32, #tpu.memory_space<vmem>>) attributes {dimension_semantics = [#tpu.dimension_semantics<arbitrary>], iteration_bounds = array<i64: 1>, scalar_prefetch = 0 : i64, scratch_operands = 0 : i64, tpu.core_type = #tpu.core_type<tc>, window_params = [{pipeline_mode = #tpu.pipeline_mode<synchronous>, transform_indices = @transform_0, window_bounds = array<i64: 2, 52>}, {pipeline_mode = #tpu.pipeline_mode<synchronous>, transform_indices = @transform_1, window_bounds = array<i64: 52, 1536>}, {pipeline_mode = #tpu.pipeline_mode<synchronous>, transform_indices = @transform_2, window_bounds = array<i64: 1, 1536>}, {pipeline_mode = #tpu.pipeline_mode<synchronous>, transform_indices = @transform_3, window_bounds = array<i64: 32, 5>}, {pipeline_mode = #tpu.pipeline_mode<synchronous>, transform_indices = @transform_4, window_bounds = array<i64: 5, 512>}, {pipeline_mode = #tpu.pipeline_mode<synchronous>, transform_indices = @transform_5, window_bounds = array<i64: 6, 512>}]} {
    %c0 = arith.constant 0 : index
    %c0_0 = arith.constant 0 : index
    %0 = vector.load %arg1[%c0, %c0_0] : memref<2x52xf32, #tpu.memory_space<vmem>>, vector<2x52xf32>
    %c0_1 = arith.constant 0 : index
    %c0_2 = arith.constant 0 : index
    %1 = vector.load %arg2[%c0_1, %c0_2] : memref<52x1536xf32, #tpu.memory_space<vmem>>, vector<52x1536xf32>
    %cst = arith.constant dense<0.000000e+00> : vector<2x1536xf32>
    %2 = tpu.matmul %0, %1, %cst {dimension_numbers = #tpu.dot_dimension_numbers<[1], [0], [0], [1], [0, 0, 1, 1], [], []>} : vector<2x52xf32>, vector<52x1536xf32>, vector<2x1536xf32> -> vector<2x1536xf32>
    %c0_3 = arith.constant 0 : index
    %c0_4 = arith.constant 0 : index
    %3 = vector.load %arg3[%c0_3, %c0_4] : memref<1x1536xf32, #tpu.memory_space<vmem>>, vector<1x1536xf32>
    %4 = vector.broadcast %3 : vector<1x1536xf32> to vector<2x1536xf32>
    %5 = arith.addf %4, %2 : vector<2x1536xf32>
    %c0_5 = arith.constant 0 : index
    %c0_6 = arith.constant 0 : index
    %6 = vector.load %arg4[%c0_5, %c0_6] : memref<32x5xf32, #tpu.memory_space<vmem>>, vector<32x5xf32>
    %c0_7 = arith.constant 0 : index
    %c0_8 = arith.constant 0 : index
    %7 = vector.load %arg5[%c0_7, %c0_8] : memref<5x512xf32, #tpu.memory_space<vmem>>, vector<5x512xf32>
    %8 = vector.extract_strided_slice %6 {offsets = [0, 0], sizes = [32, 1], strides = [1, 1]} : vector<32x5xf32> to vector<32x1xf32>
    %9 = vector.extract_strided_slice %7 {offsets = [0, 0], sizes = [1, 512], strides = [1, 1]} : vector<5x512xf32> to vector<1x512xf32>
    %10 = vector.broadcast %8 : vector<32x1xf32> to vector<32x512xf32>
    %11 = vector.broadcast %9 : vector<1x512xf32> to vector<32x512xf32>
    %12 = arith.mulf %10, %11 : vector<32x512xf32>
    %13 = vector.extract_strided_slice %6 {offsets = [0, 1], sizes = [32, 1], strides = [1, 1]} : vector<32x5xf32> to vector<32x1xf32>
    %14 = vector.extract_strided_slice %7 {offsets = [1, 0], sizes = [1, 512], strides = [1, 1]} : vector<5x512xf32> to vector<1x512xf32>
    %15 = vector.broadcast %13 : vector<32x1xf32> to vector<32x512xf32>
    %16 = vector.broadcast %14 : vector<1x512xf32> to vector<32x512xf32>
    %17 = arith.mulf %15, %16 : vector<32x512xf32>
    %18 = arith.addf %12, %17 : vector<32x512xf32>
    %19 = vector.extract_strided_slice %6 {offsets = [0, 2], sizes = [32, 1], strides = [1, 1]} : vector<32x5xf32> to vector<32x1xf32>
    %20 = vector.extract_strided_slice %7 {offsets = [2, 0], sizes = [1, 512], strides = [1, 1]} : vector<5x512xf32> to vector<1x512xf32>
    %21 = vector.broadcast %19 : vector<32x1xf32> to vector<32x512xf32>
    %22 = vector.broadcast %20 : vector<1x512xf32> to vector<32x512xf32>
    %23 = arith.mulf %21, %22 : vector<32x512xf32>
    %24 = arith.addf %18, %23 : vector<32x512xf32>
    %25 = vector.extract_strided_slice %6 {offsets = [0, 3], sizes = [32, 1], strides = [1, 1]} : vector<32x5xf32> to vector<32x1xf32>
    %26 = vector.extract_strided_slice %7 {offsets = [3, 0], sizes = [1, 512], strides = [1, 1]} : vector<5x512xf32> to vector<1x512xf32>
    %27 = vector.broadcast %25 : vector<32x1xf32> to vector<32x512xf32>
    %28 = vector.broadcast %26 : vector<1x512xf32> to vector<32x512xf32>
    %29 = arith.mulf %27, %28 : vector<32x512xf32>
    %30 = arith.addf %24, %29 : vector<32x512xf32>
    %31 = vector.extract_strided_slice %6 {offsets = [0, 4], sizes = [32, 1], strides = [1, 1]} : vector<32x5xf32> to vector<32x1xf32>
    %32 = vector.extract_strided_slice %7 {offsets = [4, 0], sizes = [1, 512], strides = [1, 1]} : vector<5x512xf32> to vector<1x512xf32>
    %33 = vector.broadcast %31 : vector<32x1xf32> to vector<32x512xf32>
    %34 = vector.broadcast %32 : vector<1x512xf32> to vector<32x512xf32>
    %35 = arith.mulf %33, %34 : vector<32x512xf32>
    %36 = arith.addf %30, %35 : vector<32x512xf32>
    %37 = vector.extract_strided_slice %36 {offsets = [0, 0], sizes = [16, 512], strides = [1, 1]} : vector<32x512xf32> to vector<16x512xf32>
    %38 = vector.extract_strided_slice %5 {offsets = [0, 0], sizes = [1, 512], strides = [1, 1]} : vector<2x1536xf32> to vector<1x512xf32>
    %39 = vector.extract_strided_slice %5 {offsets = [0, 512], sizes = [1, 512], strides = [1, 1]} : vector<2x1536xf32> to vector<1x512xf32>
    %40 = vector.extract_strided_slice %5 {offsets = [0, 1024], sizes = [1, 512], strides = [1, 1]} : vector<2x1536xf32> to vector<1x512xf32>
    %41 = vector.extract_strided_slice %37 {offsets = [0, 0], sizes = [4, 512], strides = [1, 1]} : vector<16x512xf32> to vector<4x512xf32>
    %42 = vector.broadcast %38 : vector<1x512xf32> to vector<4x512xf32>
    %43 = arith.mulf %41, %42 : vector<4x512xf32>
    %44 = vector.extract_strided_slice %37 {offsets = [4, 0], sizes = [4, 512], strides = [1, 1]} : vector<16x512xf32> to vector<4x512xf32>
    %45 = vector.broadcast %39 : vector<1x512xf32> to vector<4x512xf32>
    %46 = arith.mulf %44, %45 : vector<4x512xf32>
    %47 = arith.addf %43, %46 : vector<4x512xf32>
    %48 = vector.extract_strided_slice %37 {offsets = [8, 0], sizes = [4, 512], strides = [1, 1]} : vector<16x512xf32> to vector<4x512xf32>
    %49 = vector.broadcast %40 : vector<1x512xf32> to vector<4x512xf32>
    %50 = arith.mulf %48, %49 : vector<4x512xf32>
    %51 = arith.addf %47, %50 : vector<4x512xf32>
    %52 = vector.extract_strided_slice %37 {offsets = [12, 0], sizes = [4, 512], strides = [1, 1]} : vector<16x512xf32> to vector<4x512xf32>
    %53 = arith.addf %51, %52 : vector<4x512xf32>
    %54 = vector.extract_strided_slice %53 {offsets = [0, 0], sizes = [3, 512], strides = [1, 1]} : vector<4x512xf32> to vector<3x512xf32>
    %c0_9 = arith.constant 0 : index
    %c0_10 = arith.constant 0 : index
    %55 = vector.load %arg6[%c0_9, %c0_10] : memref<6x512xf32, #tpu.memory_space<vmem>>, vector<3x512xf32>
    tpu.vector_store %arg6[%c0_9, %c0_10], %54 {strides = array<i32>} : memref<6x512xf32, #tpu.memory_space<vmem>>, vector<3x512xf32>,
    %56 = vector.extract_strided_slice %36 {offsets = [16, 0], sizes = [16, 512], strides = [1, 1]} : vector<32x512xf32> to vector<16x512xf32>
    %57 = vector.extract_strided_slice %5 {offsets = [1, 0], sizes = [1, 512], strides = [1, 1]} : vector<2x1536xf32> to vector<1x512xf32>
    %58 = vector.extract_strided_slice %5 {offsets = [1, 512], sizes = [1, 512], strides = [1, 1]} : vector<2x1536xf32> to vector<1x512xf32>
    %59 = vector.extract_strided_slice %5 {offsets = [1, 1024], sizes = [1, 512], strides = [1, 1]} : vector<2x1536xf32> to vector<1x512xf32>
    %60 = vector.extract_strided_slice %56 {offsets = [0, 0], sizes = [4, 512], strides = [1, 1]} : vector<16x512xf32> to vector<4x512xf32>
    %61 = vector.broadcast %57 : vector<1x512xf32> to vector<4x512xf32>
    %62 = arith.mulf %60, %61 : vector<4x512xf32>
    %63 = vector.extract_strided_slice %56 {offsets = [4, 0], sizes = [4, 512], strides = [1, 1]} : vector<16x512xf32> to vector<4x512xf32>
    %64 = vector.broadcast %58 : vector<1x512xf32> to vector<4x512xf32>
    %65 = arith.mulf %63, %64 : vector<4x512xf32>
    %66 = arith.addf %62, %65 : vector<4x512xf32>
    %67 = vector.extract_strided_slice %56 {offsets = [8, 0], sizes = [4, 512], strides = [1, 1]} : vector<16x512xf32> to vector<4x512xf32>
    %68 = vector.broadcast %59 : vector<1x512xf32> to vector<4x512xf32>
    %69 = arith.mulf %67, %68 : vector<4x512xf32>
    %70 = arith.addf %66, %69 : vector<4x512xf32>
    %71 = vector.extract_strided_slice %56 {offsets = [12, 0], sizes = [4, 512], strides = [1, 1]} : vector<16x512xf32> to vector<4x512xf32>
    %72 = arith.addf %70, %71 : vector<4x512xf32>
    %73 = vector.extract_strided_slice %72 {offsets = [0, 0], sizes = [3, 512], strides = [1, 1]} : vector<4x512xf32> to vector<3x512xf32>
    %c3 = arith.constant 3 : index
    %c0_11 = arith.constant 0 : index
    %74 = vector.load %arg6[%c3, %c0_11] : memref<6x512xf32, #tpu.memory_space<vmem>>, vector<3x512xf32>
    tpu.vector_store %arg6[%c3, %c0_11], %73 {strides = array<i32>} : memref<6x512xf32, #tpu.memory_space<vmem>>, vector<3x512xf32>,
    return
  }
  func.func @transform_0(%arg0: i32) -> (i32, i32) {
    %c0_i32 = arith.constant 0 : i32
    %c0_i32_0 = arith.constant 0 : i32
    %c0_i32_1 = arith.constant 0 : i32
    return %c0_i32, %c0_i32_0 : i32, i32
  }
  func.func @transform_1(%arg0: i32) -> (i32, i32) {
    %c0_i32 = arith.constant 0 : i32
    %c0_i32_0 = arith.constant 0 : i32
    %c0_i32_1 = arith.constant 0 : i32
    return %c0_i32, %c0_i32_0 : i32, i32
  }
  func.func @transform_2(%arg0: i32) -> (i32, i32) {
    %c0_i32 = arith.constant 0 : i32
    %c0_i32_0 = arith.constant 0 : i32
    %c0_i32_1 = arith.constant 0 : i32
    return %c0_i32, %c0_i32_0 : i32, i32
  }
  func.func @transform_3(%arg0: i32) -> (i32, i32) {
    %c0_i32 = arith.constant 0 : i32
    %c0_i32_0 = arith.constant 0 : i32
    %c0_i32_1 = arith.constant 0 : i32
    return %c0_i32, %c0_i32_0 : i32, i32
  }
  func.func @transform_4(%arg0: i32) -> (i32, i32) {
    %c0_i32 = arith.constant 0 : i32
    %c0_i32_0 = arith.constant 0 : i32
    %c0_i32_1 = arith.constant 0 : i32
    return %c0_i32, %c0_i32_0 : i32, i32
  }
  func.func @transform_5(%arg0: i32) -> (i32, i32) {
    %c0_i32 = arith.constant 0 : i32
    %c0_i32_0 = arith.constant 0 : i32
    %c0_i32_1 = arith.constant 0 : i32
    return %c0_i32, %c0_i32_0 : i32, i32
  }
}

</mosaic_0001>

<bundles_post_ra>
// kernel: flame_forward_pallas.1
= control target key start
LH: loop header
LB: loop body
LE: loop exit
PB: predicated region body
PF: predicated region fallthrough
CT: control target
= control target key end

     0   :  { %v1292_v3 = vmov 0.0   ;;  %v1293_v8 = vmov 0   ;;  %v1294_v9 = vmov 1   ;;  %vm109_vm0 = vcmask 1043456   ;;  %s2011_s1 = inlined_call_operand.vmem [shape: f32[52,1536], index: 1, kind: input, shape index: {}]   ;;  %s2012_s0 = inlined_call_operand.vmem [shape: f32[2,52], index: 0, kind: input, shape index: {}]   ;;  %s2013_s3 = inlined_call_operand.vmem [shape: f32[32,5], index: 3, kind: input, shape index: {}]   ;;  %s2014_s4 = inlined_call_operand.vmem [shape: f32[5,512], index: 4, kind: input, shape index: {}]   ;;  %s2015_s2 = inlined_call_operand.vmem [shape: f32[1,1536], index: 2, kind: input, shape index: {}]   ;;  %s2016_s5 = inlined_call_operand.vmem [shape: f32[6,512], index: 5, kind: output, shape index: {}]  }
   0x1   :  { %v22_v0 = vld [vmem:[%s2011_s1 + $0x8] sm:$0xff]  ;;  %v24_v2 = vld [vmem:[%s2011_s1 + $0x18] sm:$0xff]  ;;  %210 = vmatprep.mubr.f32.mxu0 %v1292_v3  ;;  %281 = vmatprep.mubr.f32.mxu1 %v1292_v3  ;;  %v21_v6 = vld [vmem:[%s2011_s1] sm:$0xff]  ;;  %vm105_vm1 = vcmask 424960  }
   0x2   :  { %v34_v1 = vld [vmem:[%s2011_s1 + $0x68] sm:$0xff]  ;;  %v36_v5 = vld [vmem:[%s2011_s1 + $0x78] sm:$0xff]  ;;  %v33_v7 = vld [vmem:[%s2011_s1 + $0x60] sm:$0xff]  ;;  %1278 = vset.pattern.permute.xlu1 %v1293_v8  ;;  %1276 = vset.pattern.permute.xlu0 %v1294_v9 }
   0x3   :  { %v1198_v4 = vpack.c.bf16 %v34_v1, %v22_v0  ;;  %v1210_v10 = vpack.c.bf16 %v36_v5, %v24_v2  ;;  %v1200_v11 = vpack.c.bf16 %v33_v7, %v21_v6  ;;  %v23_v12 = vld [vmem:[%s2011_s1 + $0x10] sm:$0xff]  ;;  %v46_v14 = vld [vmem:[%s2011_s1 + $0xc8] sm:$0xff]  ;;  %v48_v17 = vld [vmem:[%s2011_s1 + $0xd8] sm:$0xff] }
   0x4   :  { %v35_v13 = vld [vmem:[%s2011_s1 + $0x70] sm:$0xff]  ;;  %v58_v16 = vld [vmem:[%s2011_s1 + $0x128] sm:$0xff]  ;;  %v60_v18 = vld [vmem:[%s2011_s1 + $0x138] sm:$0xff] }
   0x5   :  { %1199 = vmatprep.subr.bf16.mxu0 %v1198_v4  ;;  %v1212_v15 = vpack.c.bf16 %v35_v13, %v23_v12  ;;  %1211 = vmatprep.subr.bf16.mxu1 %v1210_v10  ;;  %v1202_v19 = vpack.c.bf16 %v58_v16, %v46_v14  ;;  %v1214_v20 = vpack.c.bf16 %v60_v18, %v48_v17  ;;  %v45_v21 = vld [vmem:[%s2011_s1 + $0xc0] sm:$0xff]  ;;  %v47_v23 = vld [vmem:[%s2011_s1 + $0xd0] sm:$0xff]  ;;  %v70_v26 = vld [vmem:[%s2011_s1 + $0x188] sm:$0xff] }
   0x6   :  { %1201 = vmatpush1.bf16.msra.mxu0 %v1200_v11  ;;  %v57_v22 = vld [vmem:[%s2011_s1 + $0x120] sm:$0xff]  ;;  %v59_v25 = vld [vmem:[%s2011_s1 + $0x130] sm:$0xff]  ;;  %v82_v27 = vld [vmem:[%s2011_s1 + $0x1e8] sm:$0xff] }
   0x7   :  { %1213 = vmatpush1.bf16.msra.mxu1 %v1212_v15  ;;  %v1204_v24 = vpack.c.bf16 %v57_v22, %v45_v21  ;;  %1203 = vmatprep.subr.bf16.mxu0 %v1202_v19  ;;  %v1216_v28 = vpack.c.bf16 %v59_v25, %v47_v23  ;;  %v1206_v29 = vpack.c.bf16 %v82_v27, %v70_v26  ;;  %v72_v30 = vld [vmem:[%s2011_s1 + $0x198] sm:$0xff]  ;;  %v69_v32 = vld [vmem:[%s2011_s1 + $0x180] sm:$0xff]  ;;  %v71_v35 = vld [vmem:[%s2011_s1 + $0x190] sm:$0xff] }
   0x8   :  { %1215 = vmatprep.subr.bf16.mxu1 %v1214_v20  ;;  %v84_v31 = vld [vmem:[%s2011_s1 + $0x1f8] sm:$0xff]  ;;  %v81_v34 = vld [vmem:[%s2011_s1 + $0x1e0] sm:$0xff]  ;;  %v83_v36 = vld [vmem:[%s2011_s1 + $0x1f0] sm:$0xff] }
   0x9   :  { %v1218_v33 = vpack.c.bf16 %v84_v31, %v72_v30  ;;  %v1208_v37 = vpack.c.bf16 %v81_v34, %v69_v32  ;;  %v1220_v38 = vpack.c.bf16 %v83_v36, %v71_v35  ;;  %v94_v39 = vld [vmem:[%s2011_s1 + $0x248] sm:$0xf]  ;;  %v96_v40 = vld [vmem:[%s2011_s1 + $0x258] sm:$0xf]  ;;  %v93_v42 = vld [vmem:[%s2011_s1 + $0x240] sm:$0xf] }
   0xa   :  { %1205 = vmatpush1.bf16.msra.mxu0 %v1204_v24  ;;  %v26_v41 = vld [vmem:[%s2011_s1 + $0x28] sm:$0xff]  ;;  %v28_v44 = vld [vmem:[%s2011_s1 + $0x38] sm:$0xff]  ;;  %v95_v46 = vld [vmem:[%s2011_s1 + $0x250] sm:$0xf] }
   0xb   :  { %1217 = vmatpush1.bf16.msra.mxu1 %v1216_v28  ;;  %1207 = vmatprep.subr.bf16.mxu0 %v1206_v29  ;;  %v38_v43 = vld [vmem:[%s2011_s1 + $0x88] sm:$0xff]  ;;  %v40_v45 = vld [vmem:[%s2011_s1 + $0x98] sm:$0xff]  ;;  %v25_v47 = vld [vmem:[%s2011_s1 + $0x20] sm:$0xff] }
   0xc   :  { %1219 = vmatprep.subr.bf16.mxu1 %v1218_v33  ;;  %v37_v48 = vld [vmem:[%s2011_s1 + $0x80] sm:$0xff]  ;;  %v27_v49 = vld [vmem:[%s2011_s1 + $0x30] sm:$0xff]  ;;  %v50_v51 = vld [vmem:[%s2011_s1 + $0xe8] sm:$0xff]  ;;  %v1222_v54 = vpack.c.bf16 %v38_v43, %v26_v41  ;;  %v1234_v57 = vpack.c.bf16 %v40_v45, %v28_v44 }
   0xd   :  { %v39_v50 = vld [vmem:[%s2011_s1 + $0x90] sm:$0xff]  ;;  %v62_v52 = vld [vmem:[%s2011_s1 + $0x148] sm:$0xff]  ;;  %v1451_v53 = vld [vmem:[%s2012_s0] sm:$0x3]  ;;  %v1224_v58 = vpack.c.bf16 %v37_v48, %v25_v47 }
   0xe   :  { %1209 = vmatpush1.bf16.msra.mxu0 %v1208_v37  ;;  %v52_v55 = vld [vmem:[%s2011_s1 + $0xf8] sm:$0xff]  ;;  %v1236_v59 = vpack.c.bf16 %v39_v50, %v27_v49  ;;  %v1226_v60 = vpack.c.bf16 %v62_v52, %v50_v51  ;;  %v49_v61 = vld [vmem:[%s2011_s1 + $0xe0] sm:$0xff]  ;;  %v51_v63 = vld [vmem:[%s2011_s1 + $0xf0] sm:$0xff] }
   0xf   :  { %1221 = vmatpush1.bf16.msra.mxu1 %v1220_v38  ;;  %1180 = vmatprep.subr.msk.mxu0 %vm109_vm0, %v94_v39  ;;  %v64_v56 = vld [vmem:[%s2011_s1 + $0x158] sm:$0xff]  ;;  %v61_v62 = vld [vmem:[%s2011_s1 + $0x140] sm:$0xff]  ;;  %v63_v1 = vld [vmem:[%s2011_s1 + $0x150] sm:$0xff] }
  0x10   :  { %1183 = vmatprep.subr.msk.mxu1 %vm109_vm0, %v96_v40  ;;  %v1238_v0 = vpack.c.bf16 %v64_v56, %v52_v55  ;;  %v74_v2 = vld [vmem:[%s2011_s1 + $0x1a8] sm:$0xff]  ;;  %v76_v5 = vld [vmem:[%s2011_s1 + $0x1b8] sm:$0xff]  ;;  %v1228_v7 = vpack.c.bf16 %v61_v62, %v49_v61  ;;  %v1240_v10 = vpack.c.bf16 %v63_v1, %v51_v63  ;;  %v73_v12 = vld [vmem:[%s2011_s1 + $0x1a0] sm:$0xff]  ;;  %v1295_v63 = vmov 2  }
  0x11   :  { %v86_v4 = vld [vmem:[%s2011_s1 + $0x208] sm:$0xff]  ;;  %v88_v6 = vld [vmem:[%s2011_s1 + $0x218] sm:$0xff]  ;;  %v85_v13 = vld [vmem:[%s2011_s1 + $0x200] sm:$0xff] }
  0x12   :  { %1181 = vmatpush1.msk.msra.mxu0 %vm109_vm0, %v93_v42  ;;  %v1230_v11 = vpack.c.bf16 %v86_v4, %v74_v2  ;;  %v1242_v14 = vpack.c.bf16 %v88_v6, %v76_v5  ;;  %v75_v15 = vld [vmem:[%s2011_s1 + $0x1b0] sm:$0xff]  ;;  %v1232_v17 = vpack.c.bf16 %v85_v13, %v73_v12  ;;  %v98_v19 = vld [vmem:[%s2011_s1 + $0x268] sm:$0xf]  ;;  %v100_v20 = vld [vmem:[%s2011_s1 + $0x278] sm:$0xf]  ;;  %v1296_v4 = vmov 3  }
  0x13   :  { %1184 = vmatpush1.msk.msra.mxu1 %vm109_vm0, %v95_v46  ;;  %1182 = vmatmul.mubr.msk.f32.vlgmr.msra.gmra.mrb[0].mxu0 %vm105_vm1, %v1451_v53  ;;  %v87_v16 = vld [vmem:[%s2011_s1 + $0x210] sm:$0xff]  ;;  %v30_v21 = vld [vmem:[%s2011_s1 + $0x48] sm:$0xff]  ;;  %v32_v23 = vld [vmem:[%s2011_s1 + $0x58] sm:$0xff] }
  0x14   :  { %1185 = vmatmul.mubr.msk.f32.vlgmr.msra.gmra.mrb[0].mxu1 %vm105_vm1, %v1451_v53  ;;  %1223 = vmatprep.subr.bf16.mxu0 %v1222_v54  ;;  %v1244_v18 = vpack.c.bf16 %v87_v16, %v75_v15  ;;  %v42_v22 = vld [vmem:[%s2011_s1 + $0xa8] sm:$0xff]  ;;  %v97_v24 = vld [vmem:[%s2011_s1 + $0x260] sm:$0xf]  ;;  %v44_v25 = vld [vmem:[%s2011_s1 + $0xb8] sm:$0xff] }
  0x15   :  { %1235 = vmatprep.subr.bf16.mxu1 %v1234_v57  ;;  %1225 = vmatpush1.bf16.msra.mxu0 %v1224_v58  ;;  %v29_v26 = vld [vmem:[%s2011_s1 + $0x40] sm:$0xff]  ;;  %v31_v28 = vld [vmem:[%s2011_s1 + $0x50] sm:$0xff]  ;;  %v54_v31 = vld [vmem:[%s2011_s1 + $0x108] sm:$0xff]  ;;  %v1246_v35 = vpack.c.bf16 %v42_v22, %v30_v21  ;;  %v1258_v38 = vpack.c.bf16 %v44_v25, %v32_v23 }
  0x16   :  { %1237 = vmatpush1.bf16.msra.mxu1 %v1236_v59  ;;  %1227 = vmatprep.subr.bf16.mxu0 %v1226_v60  ;;  %v41_v27 = vld [vmem:[%s2011_s1 + $0xa0] sm:$0xff]  ;;  %v43_v29 = vld [vmem:[%s2011_s1 + $0xb0] sm:$0xff]  ;;  %v66_v32 = vld [vmem:[%s2011_s1 + $0x168] sm:$0xff] }
  0x17   :  { %1239 = vmatprep.subr.bf16.mxu1 %v1238_v0  ;;  %352 = vmatprep.mubr.f32.mxu0 %v1292_v3  ;;  %v1539_v30 = vld [vmem:[%s2013_s3] sm:$0xff]  ;;  %v1551_v33 = vld [vmem:[%s2013_s3 + $0x10] sm:$0xff]  ;;  %v56_v36 = vld [vmem:[%s2011_s1 + $0x118] sm:$0xff]  ;;  %v1248_v39 = vpack.c.bf16 %v41_v27, %v29_v26  ;;  %v1260_v40 = vpack.c.bf16 %v43_v29, %v31_v28  ;;  %v1250_v41 = vpack.c.bf16 %v66_v32, %v54_v31 }
  0x18   :  { %423 = vmatprep.mubr.f32.mxu1 %v1292_v3  ;;  %v99_v34 = vld [vmem:[%s2011_s1 + $0x270] sm:$0xf]  ;;  %v68_v37 = vld [vmem:[%s2011_s1 + $0x178] sm:$0xff]  ;;  %658 = vperm.xlu1 %1278, %v1539_v30   ;;  %v53_v42 = vld [vmem:[%s2011_s1 + $0x100] sm:$0xff] }
  0x19   :  { %1229 = vmatpush1.bf16.msra.mxu0 %v1228_v7  ;;  %717 = vperm.xlu0 %1276, %v1551_v33   ;;  %v65_v43 = vld [vmem:[%s2011_s1 + $0x160] sm:$0xff]  ;;  %v55_v44 = vld [vmem:[%s2011_s1 + $0x110] sm:$0xff]  ;;  %v1262_v45 = vpack.c.bf16 %v68_v37, %v56_v36  ;;  %v78_v47 = vld [vmem:[%s2011_s1 + $0x1c8] sm:$0xff]  ;;  %v576_v7 = vlaneseq }
  0x1a   :  { %1241 = vmatpush1.bf16.msra.mxu1 %v1240_v10  ;;  %1231 = vmatprep.subr.bf16.mxu0 %v1230_v11  ;;  %v67_v46 = vld [vmem:[%s2011_s1 + $0x170] sm:$0xff]  ;;  %v90_v48 = vld [vmem:[%s2011_s1 + $0x228] sm:$0xff]  ;;  %v80_v49 = vld [vmem:[%s2011_s1 + $0x1d8] sm:$0xff]  ;;  %v1252_v51 = vpack.c.bf16 %v65_v43, %v53_v42 }
  0x1b   :  { %1243 = vmatprep.subr.bf16.mxu1 %v1242_v14  ;;  %v92_v50 = vld [vmem:[%s2011_s1 + $0x238] sm:$0xff]  ;;  %v1264_v52 = vpack.c.bf16 %v67_v46, %v55_v44  ;;  %v1254_v54 = vpack.c.bf16 %v90_v48, %v78_v47  ;;  %v77_v55 = vld [vmem:[%s2011_s1 + $0x1c0] sm:$0xff]  ;;  %v79_v58 = vld [vmem:[%s2011_s1 + $0x1d0] sm:$0xff]  ;;  %v1654_v11 = vshrl.u32 %v576_v7, 7 }
  0x1c   :  { %v89_v56 = vld [vmem:[%s2011_s1 + $0x220] sm:$0xff]  ;;  %v1266_v57 = vpack.c.bf16 %v92_v50, %v80_v49  ;;  %v91_v59 = vld [vmem:[%s2011_s1 + $0x230] sm:$0xff]  ;;  %1279 = vset.pattern.permute.xlu1 %v1294_v9  ;;  %v102_v62 = vld [vmem:[%s2011_s1 + $0x288] sm:$0xf] }
  0x1d   :  { %1233 = vmatpush1.bf16.msra.mxu0 %v1232_v17  ;;  %v1256_v60 = vpack.c.bf16 %v89_v56, %v77_v55  ;;  %709 = vperm.xlu1 %1279, %v1539_v30   ;;  %v1268_v61 = vpack.c.bf16 %v91_v59, %v79_v58  ;;  %v101_v0 = vld [vmem:[%s2011_s1 + $0x280] sm:$0xf]  ;;  %v103_v1 = vld [vmem:[%s2011_s1 + $0x290] sm:$0xf]  ;;  %v651_v2 = vld [vmem:[%s2013_s3 + $0x18] sm:$0xff]  ;;  %v1659_v13 = vsub.s32 0, %v1654_v11 }
  0x1e   :  { %1245 = vmatpush1.bf16.msra.mxu1 %v1244_v18  ;;  %1186 = vmatprep.subr.msk.mxu0 %vm109_vm0, %v98_v19  ;;  %v649_v5 = vld [vmem:[%s2013_s3 + $0x8] sm:$0xff]  ;;  %v652_v15 = vld [vmem:[%s2014_s4] sm:$0x1f]  ;;  %v1668_v17 = vsub.s32 1, %v1654_v11  ;;  %v654_v18 = vld [vmem:[%s2014_s4 + $0x10] sm:$0x1f] }
  0x1f   :  { %1189 = vmatprep.subr.msk.mxu1 %vm109_vm0, %v100_v20  ;;  %1277 = vset.pattern.permute.xlu0 %v1293_v8  ;;  %2026 = vst [vmem:[#allocation2_spill] sm:$0xff] %v1659_v13  ;;  %v653_v16 = vld [vmem:[%s2014_s4 + $0x8] sm:$0x1f]  ;;  %v655_v19 = vld [vmem:[%s2014_s4 + $0x18] sm:$0x1f]  ;;  %v1677_v20 = vsub.s32 2, %v1654_v11  ;;  %v1685_v23 = vrot.slane %v652_v15, %v1659_v13  ;;  %v1691_v25 = vrot.slane %v654_v18, %v1659_v13 }
  0x20   :  { %668 = vperm.xlu0 %1277, %v1551_v33   ;;  %2027 = vst [vmem:[#allocation3_spill] sm:$0xff] %v1668_v17  ;;  %v1682_v22 = vsub.s32 3, %v1654_v11  ;;  %v1694_v26 = vrot.slane %v655_v19, %v1659_v13  ;;  %v1697_v27 = vrot.slane %v652_v15, %v1668_v17  ;;  %v1700_v28 = vrot.slane %v653_v16, %v1668_v17  ;;  %v1745_v47 = vld [vmem:[%s2015_s2] sm:$0xff] }
  0x21   :  { %1187 = vmatpush1.msk.msra.mxu0 %vm109_vm0, %v97_v24  ;;  %1280 = vset.pattern.permute.xlu1 %v1295_v63  ;;  %2028 = vst [vmem:[#allocation4_spill] sm:$0xff] %v1677_v20  ;;  %v1688_v24 = vrot.slane %v653_v16, %v1659_v13  ;;  %v1703_v29 = vrot.slane %v654_v18, %v1668_v17  ;;  %v1724_v37 = vsub.s32 4, %v1654_v11 }
  0x22   :  { %1190 = vmatpush1.msk.msra.mxu1 %vm109_vm0, %v99_v34  ;;  %1188 = vmatmul.mubr.msk.f32.vlgmr.msra.gmra.mrb[2].mxu0 %vm105_vm1, %v1451_v53  ;;  %2029 = vst [vmem:[#allocation5_spill] sm:$0xff] %v1682_v22  ;;  %v1709_v31 = vrot.slane %v652_v15, %v1677_v20  ;;  %v1712_v32 = vrot.slane %v653_v16, %v1677_v20 }
  0x23   :  { %1191 = vmatmul.mubr.msk.f32.vlgmr.msra.gmra.mrb[2].mxu1 %vm105_vm1, %v1451_v53  ;;  %1247 = vmatprep.subr.bf16.mxu0 %v1246_v35  ;;  %v1715_v34 = vrot.slane %v654_v18, %v1677_v20  ;;  %v1718_v35 = vrot.slane %v655_v19, %v1677_v20  ;;  %v1721_v36 = vrot.slane %v652_v15, %v1682_v22 }
  0x24   :  { %1259 = vmatprep.subr.bf16.mxu1 %v1258_v38  ;;  %1249 = vmatpush1.bf16.msra.mxu0 %v1248_v39  ;;  %2030 = vst [vmem:[#allocation6_spill] sm:$0xff] %v1724_v37  ;;  %v1727_v38 = vrot.slane %v653_v16, %v1682_v22  ;;  %v1730_v39 = vrot.slane %v654_v18, %v1682_v22 }
  0x25   :  { %1261 = vmatpush1.bf16.msra.mxu1 %v1260_v40  ;;  %1251 = vmatprep.subr.bf16.mxu0 %v1250_v41  ;;  %v1733_v40 = vrot.slane %v655_v19, %v1682_v22  ;;  %v602_v41 = vsub.s32 6, %v1654_v11  ;;  %v1758_v55 = vrot.slane %v654_v18, %v1724_v37  ;;  %v1761_v56 = vrot.slane %v655_v19, %v1724_v37 }
  0x26   :  { %1263 = vmatprep.subr.bf16.mxu1 %v1262_v45  ;;  %494 = vmatprep.mubr.f32.mxu0 %v1292_v3 }
  0x27   :  { %565 = vmatprep.mubr.f32.mxu1 %v1292_v3  ;;  %v104_v3 = vld [vmem:[%s2011_s1 + $0x298] sm:$0xf]  ;;  %781 = vperm.xlu1 %1280, %v1551_v33  }
  0x28   :  { %1253 = vmatpush1.bf16.msra.mxu0 %v1252_v51  ;;  %673 = vperm.xlu0 %1277, %v651_v2  }
  0x29   :  { %1265 = vmatpush1.bf16.msra.mxu1 %v1264_v52  ;;  %1255 = vmatprep.subr.bf16.mxu0 %v1254_v54  ;;  %v1752_v52 = vrot.slane %v652_v15, %v1724_v37  ;;  %v1755_v54 = vrot.slane %v653_v16, %v1724_v37 }
  0x2a   :  { %1267 = vmatprep.subr.bf16.mxu1 %v1266_v57 }
  0x2b   :  { %1281 = vset.pattern.permute.xlu1 %v1294_v9 }
  0x2c   :  { %1257 = vmatpush1.bf16.msra.mxu0 %v1256_v60  ;;  %721 = vperm.xlu1 %1281, %v651_v2  }
  0x2d   :  { %1269 = vmatpush1.bf16.msra.mxu1 %v1268_v61  ;;  %1192 = vmatprep.subr.msk.mxu0 %vm109_vm0, %v102_v62 }
  0x2e   :  { %1195 = vmatprep.subr.msk.mxu1 %vm109_vm0, %v104_v3  ;;  %1283 = vset.pattern.permute.xlu0 %v1296_v4  ;;  %v1774_v3 = vrot.slane %v1745_v47, %v602_v41 }
  0x2f   :  { %845 = vperm.xlu0 %1283, %v1551_v33  }
  0x30   :  { %1193 = vmatpush1.msk.msra.mxu0 %vm109_vm0, %v101_v0  ;;  %1282 = vset.pattern.permute.xlu1 %v1295_v63  ;;  %2031 = vst [vmem:[#allocation7_spill] sm:$0xff] %v1774_v3  ;;  %v606_v0 = vsub.s32 7, %v1654_v11 }
  0x31   :  { %1196 = vmatpush1.msk.msra.mxu1 %vm109_vm0, %v103_v1  ;;  %1194 = vmatmul.mubr.msk.f32.vlgmr.msra.gmra.mrb[4].mxu0 %vm105_vm1, %v1451_v53 }
  0x32   :  { %1197 = vmatmul.mubr.msk.f32.vlgmr.msra.gmra.mrb[4].mxu1 %vm105_vm1, %v1451_v53  ;;  %773 = vperm.xlu1 %1282, %v1539_v30   ;;  %v1297_v53 = vmov 4  }
  0x33   :  { %1286 = vset.pattern.permute.xlu0 %v1295_v63  ;;  %v598_v63 = vsub.s32 5, %v1654_v11 }
  0x34   :  { %785 = vperm.xlu0 %1286, %v651_v2  }
  0x36   :  { %1284 = vset.pattern.permute.xlu1 %v1293_v8 }
  0x37   :  { %663 = vperm.xlu1 %1284, %v649_v5  }
  0x38   :  { %777 = vperm.xlu0 %1286, %v649_v5  }
  0x3b   :  { %1285 = vset.pattern.permute.xlu1 %v1294_v9 }
  0x3c   :  { %1290 = vset.pattern.permute.xlu0 %v1297_v53  ;;  %713 = vperm.xlu1 %1285, %v649_v5  }
  0x3d   :  { %901 = vperm.xlu0 %1290, %v1539_v30  }
  0x40   :  { %1287 = vset.pattern.permute.xlu1 %v1296_v4 }
  0x41   :  { %905 = vperm.xlu0 %1290, %v649_v5   ;;  %837 = vperm.xlu1 %1287, %v1539_v30   ;;  %v1706_v30 = vrot.slane %v655_v19, %v1668_v17 }
  0x45   :  { %1288 = vset.pattern.permute.xlu1 %v1297_v53 }
  0x46   :  { %909 = vperm.xlu1 %1288, %v1551_v33  }
  0x4a   :  { %1289 = vset.pattern.permute.xlu1 %v1296_v4 }
  0x4b   :  { %849 = vperm.xlu1 %1289, %v651_v2  }
  0x4f   :  { %841 = vperm.xlu1 %1289, %v649_v5  }
  0x53   :  { %1291 = vset.pattern.permute.xlu1 %v1297_v53 }
  0x54   :  { %913 = vperm.xlu1 %1291, %v651_v2  }
  0x97   :  { %v1648_v8 = vpop.permute.xlu1 %658 }
  0x98   :  { %v718_v10 = vpop.permute.xlu0 %717  ;;  %v692_v11 = vmul.f32 %v1685_v23, %v1648_v8  ;;  %v693_v16 = vmul.f32 %v1688_v24, %v1648_v8  ;;  %v694_v18 = vmul.f32 %v1691_v25, %v1648_v8  ;;  %v695_v19 = vmul.f32 %v1694_v26, %v1648_v8 }
  0x99   :  { %v748_v42 = vmul.f32 %v1697_v27, %v718_v10  ;;  %v749_v43 = vmul.f32 %v1700_v28, %v718_v10  ;;  %v750_v44 = vmul.f32 %v1703_v29, %v718_v10  ;;  %v751_v45 = vmul.f32 %v1706_v30, %v718_v10 }
  0x9c   :  { %v1650_v9 = vpop.permute.xlu1 %709 }
  0x9d   :  { %v740_v41 = vmul.f32 %v1697_v27, %v1650_v9 }
  0x9f   :  { %v669_v14 = vpop.permute.xlu0 %668 }
  0xa0   :  { %v700_v48 = vmul.f32 %v1685_v23, %v669_v14  ;;  %v701_v49 = vmul.f32 %v1688_v24, %v669_v14  ;;  %v702_v50 = vmul.f32 %v1691_v25, %v669_v14  ;;  %v703_v51 = vmul.f32 %v1694_v26, %v669_v14 }
  0xa2   :  { %v764_v1 = vadd.f32 %v748_v42, %v700_v48  ;;  %v765_v2 = vadd.f32 %v749_v43, %v701_v49  ;;  %v766_v4 = vadd.f32 %v750_v44, %v702_v50  ;;  %v767_v5 = vadd.f32 %v751_v45, %v703_v51 }
  0xa3   :  { %v741_v42 = vmul.f32 %v1700_v28, %v1650_v9  ;;  %v743_v43 = vmul.f32 %v1706_v30, %v1650_v9 }
  0xa5   :  { %v759_v37 = vadd.f32 %v743_v43, %v695_v19 }
  0xa6   :  { %v1652_v6 = vpop.permute.xlu1 %781 }
  0xa7   :  { %v674_v33 = vpop.permute.xlu0 %673  ;;  %v812_v53 = vmul.f32 %v1709_v31, %v1652_v6  ;;  %v813_v7 = vmul.f32 %v1712_v32, %v1652_v6  ;;  %v814_v10 = vmul.f32 %v1715_v34, %v1652_v6  ;;  %v815_v14 = vmul.f32 %v1718_v35, %v1652_v6 }
  0xa8   :  { %v742_v6 = vmul.f32 %v1703_v29, %v1650_v9  ;;  %v704_v44 = vmul.f32 %v1685_v23, %v674_v33  ;;  %v705_v45 = vmul.f32 %v1688_v24, %v674_v33  ;;  %v706_v48 = vmul.f32 %v1691_v25, %v674_v33 }
  0xa9   :  { %v707_v8 = vmul.f32 %v1694_v26, %v674_v33  ;;  %v828_v50 = vadd.f32 %v812_v53, %v764_v1  ;;  %v829_v51 = vadd.f32 %v813_v7, %v765_v2  ;;  %v830_v62 = vadd.f32 %v814_v10, %v766_v4 }
  0xaa   :  { %v831_v61 = vadd.f32 %v815_v14, %v767_v5  ;;  %v756_v5 = vadd.f32 %v740_v41, %v692_v11  ;;  %v757_v53 = vadd.f32 %v741_v42, %v693_v16  ;;  %v1819_v7 = vrot.slane %v1745_v47, %v598_v63 }
  0xab   :  { %v1656_v12 = vpop.permute.xlu1 %721  ;;  %v1822_v10 = vrot.slane %v1745_v47, %v606_v0  ;;  %v758_v14 = vadd.f32 %v742_v6, %v694_v18 }
  0xac   :  { %v752_v60 = vmul.f32 %v1697_v27, %v1656_v12  ;;  %v753_v59 = vmul.f32 %v1700_v28, %v1656_v12  ;;  %v754_v9 = vmul.f32 %v1703_v29, %v1656_v12  ;;  %v755_v58 = vmul.f32 %v1706_v30, %v1656_v12 }
  0xae   :  { %v846_v57 = vpop.permute.xlu0 %845  ;;  %v768_v17 = vadd.f32 %v752_v60, %v704_v44  ;;  %v769_v20 = vadd.f32 %v753_v59, %v705_v45  ;;  %v771_v13 = vadd.f32 %v755_v58, %v707_v8 }
  0xaf   :  { %v876_v3 = vmul.f32 %v1721_v36, %v846_v57  ;;  %v877_v33 = vmul.f32 %v1727_v38, %v846_v57  ;;  %v878_v1 = vmul.f32 %v1730_v39, %v846_v57  ;;  %v879_v2 = vmul.f32 %v1733_v40, %v846_v57 }
  0xb0   :  { %v770_v57 = vadd.f32 %v754_v9, %v706_v48 }
  0xb1   :  { %v1679_v21 = vpop.permute.xlu1 %773  ;;  %v1828_v16 = vadd.f32 %v876_v3, %v828_v50  ;;  %v1830_v63 = vadd.f32 %v877_v33, %v829_v51  ;;  %v1832_v41 = vadd.f32 %v878_v1, %v830_v62  ;;  %v1834_v0 = vadd.f32 %v879_v2, %v831_v61 }
  0xb2   :  { %v804_v12 = vmul.f32 %v1709_v31, %v1679_v21  ;;  %v805_v22 = vmul.f32 %v1712_v32, %v1679_v21  ;;  %v806_v18 = vmul.f32 %v1715_v34, %v1679_v21  ;;  %v807_v19 = vmul.f32 %v1718_v35, %v1679_v21 }
  0xb3   :  { %v786_v49 = vpop.permute.xlu0 %785 }
  0xb4   :  { %v816_v60 = vmul.f32 %v1709_v31, %v786_v49  ;;  %v817_v59 = vmul.f32 %v1712_v32, %v786_v49  ;;  %v820_v58 = vadd.f32 %v804_v12, %v756_v5  ;;  %v821_v42 = vadd.f32 %v805_v22, %v757_v53 }
  0xb5   :  { %v818_v3 = vmul.f32 %v1715_v34, %v786_v49  ;;  %v819_v6 = vmul.f32 %v1718_v35, %v786_v49  ;;  %v822_v49 = vadd.f32 %v806_v18, %v758_v14  ;;  %v823_v50 = vadd.f32 %v807_v19, %v759_v37 }
  0xb6   :  { %v1740_v46 = vpop.permute.xlu1 %663  ;;  %v1858_v51 = vadd.f32 %v817_v59, %v769_v20 }
  0xb7   :  { %v778_v11 = vpop.permute.xlu0 %777  ;;  %v696_v61 = vmul.f32 %v1685_v23, %v1740_v46  ;;  %v697_v43 = vmul.f32 %v1688_v24, %v1740_v46  ;;  %v698_v45 = vmul.f32 %v1691_v25, %v1740_v46  ;;  %v699_v22 = vmul.f32 %v1694_v26, %v1740_v46 }
  0xb8   :  { %v1856_v23 = vadd.f32 %v816_v60, %v768_v17  ;;  %v810_v20 = vmul.f32 %v1715_v34, %v778_v11  ;;  %v835_v1 = vadd.f32 %v819_v6, %v771_v13 }
  0xbb   :  { %v714_v15 = vpop.permute.xlu1 %713 }
  0xbc   :  { %v744_v44 = vmul.f32 %v1697_v27, %v714_v15  ;;  %v745_v21 = vmul.f32 %v1700_v28, %v714_v15  ;;  %v746_v48 = vmul.f32 %v1703_v29, %v714_v15  ;;  %v747_v8 = vmul.f32 %v1706_v30, %v714_v15  ;;  %v902_v24 = vpop.permute.xlu0 %901 }
  0xbd   :  { %v808_v27 = vmul.f32 %v1709_v31, %v778_v11  ;;  %v809_v29 = vmul.f32 %v1712_v32, %v778_v11  ;;  %v811_v15 = vmul.f32 %v1718_v35, %v778_v11  ;;  %v834_v31 = vadd.f32 %v818_v3, %v770_v57 }
  0xbe   :  { %v760_v26 = vadd.f32 %v744_v44, %v696_v61  ;;  %v761_v46 = vadd.f32 %v745_v21, %v697_v43  ;;  %v762_v37 = vadd.f32 %v746_v48, %v698_v45  ;;  %v763_v17 = vadd.f32 %v747_v8, %v699_v22 }
  0xbf   :  { %v932_v2 = vmul.f32 %v1752_v52, %v902_v24  ;;  %v933_v5 = vmul.f32 %v1755_v54, %v902_v24  ;;  %v935_v35 = vmul.f32 %v1761_v56, %v902_v24 }
  0xc0   :  { %v838_v4 = vpop.permute.xlu1 %837  ;;  %v906_v14 = vpop.permute.xlu0 %905  ;;  %v824_v59 = vadd.f32 %v808_v27, %v760_v26  ;;  %v825_v34 = vadd.f32 %v809_v29, %v761_v46  ;;  %v826_v13 = vadd.f32 %v810_v20, %v762_v37  ;;  %v827_v11 = vadd.f32 %v811_v15, %v763_v17  ;;  %v2036_v15 = vld [vmem:[#allocation3_spill] sm:$0xff] }
  0xc1   :  { %v868_v28 = vmul.f32 %v1721_v36, %v838_v4  ;;  %v869_v25 = vmul.f32 %v1727_v38, %v838_v4  ;;  %v870_v9 = vmul.f32 %v1730_v39, %v838_v4  ;;  %v871_v30 = vmul.f32 %v1733_v40, %v838_v4 }
  0xc2   :  { %v934_v4 = vmul.f32 %v1758_v55, %v902_v24  ;;  %v1874_v6 = vmul.f32 %v1752_v52, %v906_v14  ;;  %v1881_v43 = vmul.f32 %v1758_v55, %v906_v14  ;;  %v1884_v44 = vmul.f32 %v1761_v56, %v906_v14 }
  0xc3   :  { %v884_v12 = vadd.f32 %v868_v28, %v820_v58  ;;  %v885_v18 = vadd.f32 %v869_v25, %v821_v42  ;;  %v886_v32 = vadd.f32 %v870_v9, %v822_v49  ;;  %v887_v61 = vadd.f32 %v871_v30, %v823_v50  ;;  %v2032_v9 = vld [vmem:[#allocation2_spill] sm:$0xff] }
  0xc4   :  { %v1878_v42 = vmul.f32 %v1755_v54, %v906_v14  ;;  %v2033_v26 = vrot.slane %v1745_v47, %v2032_v9 }
  0xc5   :  { %v910_v62 = vpop.permute.xlu1 %909  ;;  %v1887_v22 = vadd.f32 %v932_v2, %v884_v12  ;;  %v1889_v48 = vadd.f32 %v934_v4, %v886_v32  ;;  %v1891_v8 = vadd.f32 %v933_v5, %v885_v18  ;;  %v1896_v27 = vadd.f32 %v935_v35, %v887_v61 }
  0xc6   :  { %v940_v3 = vmul.f32 %v1752_v52, %v910_v62  ;;  %v942_v58 = vmul.f32 %v1758_v55, %v910_v62  ;;  %v941_v21 = vmul.f32 %v1755_v54, %v910_v62  ;;  %v943_v49 = vmul.f32 %v1761_v56, %v910_v62  ;;  %v2034_v62 = vld [vmem:[#allocation4_spill] sm:$0xff] }
  0xc7   :  { %v2035_v37 = vrot.slane %v1745_v47, %v2034_v62  ;;  %v2037_v2 = vrot.slane %v1745_v47, %v2036_v15 }
  0xc8   :  { %v956_v29 = vadd.f32 %v940_v3, %v1828_v16  ;;  %v958_v20 = vadd.f32 %v942_v58, %v1832_v41  ;;  %v2038_v16 = vld [vmem:[#allocation5_spill] sm:$0xff]  ;;  %v959_v4 = vadd.f32 %v943_v49, %v1834_v0 }
  0xc9   :  { %v2039_v12 = vrot.slane %v1745_v47, %v2038_v16 }
  0xca   :  { %v850_v33 = vpop.permute.xlu1 %849 }
  0xcb   :  { %v880_v50 = vmul.f32 %v1721_v36, %v850_v33  ;;  %v881_v24 = vmul.f32 %v1727_v38, %v850_v33  ;;  %v882_v28 = vmul.f32 %v1730_v39, %v850_v33  ;;  %v883_v25 = vmul.f32 %v1733_v40, %v850_v33 }
  0xcd   :  { %v1920_v32 = vadd.f32 %v880_v50, %v1856_v23  ;;  %v1923_v41 = vadd.f32 %v881_v24, %v1858_v51 }
  0xce   :  { %v842_v45 = vpop.permute.xlu1 %841 }
  0xcf   :  { %v872_v30 = vmul.f32 %v1721_v36, %v842_v45  ;;  %v873_v33 = vmul.f32 %v1727_v38, %v842_v45  ;;  %v874_v14 = vmul.f32 %v1730_v39, %v842_v45  ;;  %v875_v18 = vmul.f32 %v1733_v40, %v842_v45 }
  0xd0   :  { %v1928_v38 = vadd.f32 %v883_v25, %v835_v1 }
  0xd1   :  { %v888_v35 = vadd.f32 %v872_v30, %v824_v59  ;;  %v2042_v30 = vld [vmem:[#allocation7_spill] sm:$0xff] }
  0xd3   :  { %v914_v39 = vpop.permute.xlu1 %913 }
  0xd4   :  { %v944_v1 = vmul.f32 %v1752_v52, %v914_v39  ;;  %v945_v3 = vmul.f32 %v1755_v54, %v914_v39  ;;  %v946_v45 = vmul.f32 %v1758_v55, %v914_v39  ;;  %v947_v49 = vmul.f32 %v1761_v56, %v914_v39  ;;  %v2040_v52 = vld [vmem:[#allocation6_spill] sm:$0xff] }
  0xe6   :  { %v212_v53 = vpop.f32.mrb[0].mxu0 }
  0xe7   :  { %v283_v19 = vpop.f32.mrb[0].mxu1  ;;  %v214_v60 = vpop.f32.mrb[1].mxu0  ;;  %v636_v46 = vadd.f32 %v2033_v26, %v212_v53  ;;  %v957_v53 = vadd.f32 %v941_v21, %v1830_v63  ;;  %v891_v21 = vadd.f32 %v875_v18, %v827_v11 }
  0xe8   :  { %v285_v57 = vpop.f32.mrb[1].mxu1  ;;  %v638_v17 = vadd.f32 %v2035_v37, %v283_v19  ;;  %v637_v5 = vadd.f32 %v2037_v2, %v214_v60  ;;  %v1926_v19 = vadd.f32 %v882_v28, %v834_v31  ;;  %v889_v31 = vadd.f32 %v873_v33, %v825_v34 }
  0xe9   :  { %v639_v36 = vadd.f32 %v2039_v12, %v285_v57  ;;  %v967_v63 = vrot.slane %v636_v46, %v2032_v9  ;;  %v1067_v60 = vrot.slane %v636_v46, %v2036_v15  ;;  %v890_v57 = vadd.f32 %v874_v14, %v826_v13 }
  0xea   :  { %v975_v61 = vrot.slane %v638_v17, %v2032_v9  ;;  %v1075_v40 = vrot.slane %v638_v17, %v2036_v15  ;;  %v971_v23 = vrot.slane %v637_v5, %v2032_v9  ;;  %v1071_v51 = vrot.slane %v637_v5, %v2036_v15 }
  0xeb   :  { %v979_v0 = vrot.slane %v639_v36, %v2032_v9  ;;  %v1079_v58 = vrot.slane %v639_v36, %v2036_v15  ;;  %v980_v50 = vmul.f32 %v967_v63, %v1887_v22  ;;  %v1080_v59 = vmul.f32 %v1067_v60, %v956_v29 }
  0xec   :  { %v982_v28 = vmul.f32 %v975_v61, %v1889_v48  ;;  %v1082_v25 = vmul.f32 %v1075_v40, %v958_v20  ;;  %v981_v34 = vmul.f32 %v971_v23, %v1891_v8  ;;  %v2041_v13 = vrot.slane %v1745_v47, %v2040_v52 }
  0xed   :  { %v1081_v11 = vmul.f32 %v1071_v51, %v957_v53  ;;  %v983_v55 = vmul.f32 %v979_v0, %v1896_v27  ;;  %v1083_v2 = vmul.f32 %v1079_v58, %v959_v4 }
  0xf5   :  { %v354_v24 = vpop.f32.mrb[2].mxu0 }
  0xf6   :  { %v640_v54 = vadd.f32 %v2041_v13, %v354_v24  ;;  %v425_v26 = vpop.f32.mrb[2].mxu1  ;;  %v356_v46 = vpop.f32.mrb[3].mxu0 }
  0xf7   :  { %v642_v56 = vadd.f32 %v2042_v30, %v425_v26  ;;  %v641_v37 = vadd.f32 %v1819_v7, %v356_v46  ;;  %v427_v17 = vpop.f32.mrb[3].mxu1 }
  0xf8   :  { %v987_v5 = vrot.slane %v640_v54, %v2032_v9  ;;  %v1087_v33 = vrot.slane %v640_v54, %v2036_v15  ;;  %v643_v14 = vadd.f32 %v1822_v10, %v427_v17 }
  0xf9   :  { %v995_v47 = vrot.slane %v642_v56, %v2032_v9  ;;  %v1095_v12 = vrot.slane %v642_v56, %v2036_v15  ;;  %v991_v36 = vrot.slane %v641_v37, %v2032_v9  ;;  %v1091_v18 = vrot.slane %v641_v37, %v2036_v15 }
  0xfa   :  { %v1000_v39 = vmul.f32 %v987_v5, %v1887_v22  ;;  %v1100_v63 = vmul.f32 %v1087_v33, %v956_v29  ;;  %v999_v7 = vrot.slane %v643_v14, %v2032_v9  ;;  %v1099_v60 = vrot.slane %v643_v14, %v2036_v15 }
  0xfb   :  { %v1002_v61 = vmul.f32 %v995_v47, %v1889_v48  ;;  %v1102_v40 = vmul.f32 %v1095_v12, %v958_v20  ;;  %v1001_v10 = vmul.f32 %v991_v36, %v1891_v8  ;;  %v1101_v23 = vmul.f32 %v1091_v18, %v957_v53  ;;  %v573_v48 = vld [vmem:[%s2015_s2 + $0x8] sm:$0xf] }
  0xfc   :  { %v1008_v51 = vrot.slane %v1000_v39, 4  ;;  %v1108_v0 = vrot.slane %v1100_v63, 4  ;;  %v1003_v58 = vmul.f32 %v999_v7, %v1896_v27  ;;  %v1103_v24 = vmul.f32 %v1099_v60, %v959_v4 }
  0xfd   :  { %v1010_v52 = vrot.slane %v1002_v61, 4  ;;  %v1110_v13 = vrot.slane %v1102_v40, 4  ;;  %v1009_v54 = vrot.slane %v1001_v10, 4  ;;  %v1109_v22 = vrot.slane %v1101_v23, 4 }
  0xfe   :  { %v1016_v29 = vadd.f32 %v1008_v51, %v980_v50  ;;  %v1116_v26 = vadd.f32 %v1108_v0, %v1080_v59  ;;  %v1011_v46 = vrot.slane %v1003_v58, 4  ;;  %v1111_v30 = vrot.slane %v1103_v24, 4 }
  0xff   :  { %v1018_v20 = vadd.f32 %v1010_v52, %v982_v28  ;;  %v1118_v8 = vadd.f32 %v1110_v13, %v1082_v25  ;;  %v1017_v53 = vadd.f32 %v1009_v54, %v981_v34  ;;  %v1117_v56 = vadd.f32 %v1109_v22, %v1081_v11 }
 0x100   :  { %v952_v37 = vadd.f32 %v1874_v6, %v888_v35  ;;  %v953_v27 = vadd.f32 %v1878_v42, %v889_v31  ;;  %v1019_v4 = vadd.f32 %v1011_v46, %v983_v55  ;;  %v1119_v17 = vadd.f32 %v1111_v30, %v1083_v2 }
 0x101   :  { %v960_v5 = vadd.f32 %v944_v1, %v1920_v32  ;;  %v954_v50 = vadd.f32 %v1881_v43, %v890_v57  ;;  %v955_v59 = vadd.f32 %v1884_v44, %v891_v21  ;;  %v611_v33 = vrot.slane %v573_v48, %v2032_v9 }
 0x102   :  { %v961_v14 = vadd.f32 %v945_v3, %v1923_v41  ;;  %v962_v28 = vadd.f32 %v946_v45, %v1926_v19  ;;  %v619_v25 = vrot.slane %v573_v48, %v2034_v62  ;;  %v615_v6 = vrot.slane %v573_v48, %v2036_v15 }
 0x103   :  { %v963_v42 = vadd.f32 %v947_v49, %v1928_v38  ;;  %v623_v35 = vrot.slane %v573_v48, %v2038_v16  ;;  %v1048_v31 = vrot.slane %v952_v37, 4  ;;  %v1049_v32 = vrot.slane %v953_v27, 4 }
 0x104   :  { %v496_v1 = vpop.f32.mrb[4].mxu0  ;;  %v1148_v43 = vrot.slane %v960_v5, 4  ;;  %v1050_v57 = vrot.slane %v954_v50, 4  ;;  %v1051_v44 = vrot.slane %v955_v59, 4  ;;  %v1149_v41 = vrot.slane %v961_v14, 4 }
 0x105   :  { %v644_v21 = vadd.f32 %v611_v33, %v496_v1  ;;  %v567_v34 = vpop.f32.mrb[4].mxu1  ;;  %v498_v11 = vpop.f32.mrb[5].mxu0  ;;  %v1150_v3 = vrot.slane %v962_v28, 4  ;;  %v1151_v55 = vrot.slane %v963_v42, 4 }
 0x106   :  { %v646_v19 = vadd.f32 %v619_v25, %v567_v34  ;;  %v645_v45 = vadd.f32 %v615_v6, %v498_v11  ;;  %v569_v62 = vpop.f32.mrb[5].mxu1 }
 0x107   :  { %v1023_v2 = vrot.slane %v644_v21, %v2032_v9  ;;  %v1123_v38 = vrot.slane %v644_v21, %v2036_v15  ;;  %v647_v16 = vadd.f32 %v623_v35, %v569_v62 }
 0x108   :  { %v1031_v49 = vrot.slane %v646_v19, %v2032_v9  ;;  %v1131_v47 = vrot.slane %v646_v19, %v2036_v15  ;;  %v1027_v12 = vrot.slane %v645_v45, %v2032_v9  ;;  %v1127_v36 = vrot.slane %v645_v45, %v2036_v15 }
 0x109   :  { %v1036_v18 = vmul.f32 %v1023_v2, %v952_v37  ;;  %v1136_v39 = vmul.f32 %v1123_v38, %v960_v5  ;;  %v1035_v63 = vrot.slane %v647_v16, %v2032_v9  ;;  %v1135_v7 = vrot.slane %v647_v16, %v2036_v15 }
 0x10a   :  { %v1038_v60 = vmul.f32 %v1031_v49, %v954_v50  ;;  %v1138_v61 = vmul.f32 %v1131_v47, %v962_v28  ;;  %v1037_v40 = vmul.f32 %v1027_v12, %v953_v27  ;;  %v1137_v10 = vmul.f32 %v1127_v36, %v961_v14 }
 0x10b   :  { %v1040_v23 = vadd.f32 %v1036_v18, %v1016_v29  ;;  %v1140_v51 = vadd.f32 %v1136_v39, %v1116_v26  ;;  %v1039_v0 = vmul.f32 %v1035_v63, %v955_v59  ;;  %v1139_v58 = vmul.f32 %v1135_v7, %v963_v42 }
 0x10c   :  { %v1042_v24 = vadd.f32 %v1038_v60, %v1018_v20  ;;  %v1142_v52 = vadd.f32 %v1138_v61, %v1118_v8  ;;  %v1041_v13 = vadd.f32 %v1037_v40, %v1017_v53  ;;  %v1141_v54 = vadd.f32 %v1137_v10, %v1117_v56 }
 0x10d   :  { %v1056_v22 = vadd.f32 %v1048_v31, %v1040_v23  ;;  %v1156_v46 = vadd.f32 %v1148_v43, %v1140_v51  ;;  %v1043_v30 = vadd.f32 %v1039_v0, %v1019_v4  ;;  %v1143_v48 = vadd.f32 %v1139_v58, %v1119_v17 }
 0x10e   :  { %v1058_v37 = vadd.f32 %v1050_v57, %v1042_v24  ;;  %v1158_v9 = vadd.f32 %v1150_v3, %v1142_v52  ;;  %v1057_v5 = vadd.f32 %v1049_v32, %v1041_v13  ;;  %v1157_v15 = vadd.f32 %v1149_v41, %v1141_v54 }
 0x10f   :  { %1060 = vst [vmem:[%s2016_s5] sm:$0x7] %v1056_v22  ;;  %v1164_v29 = vrot.slane %v1156_v46, 5  ;;  %v1059_v26 = vadd.f32 %v1051_v44, %v1043_v30  ;;  %v1159_v27 = vadd.f32 %v1151_v55, %v1143_v48 }
 0x110   :  { %1062 = vst [vmem:[%s2016_s5 + $0x10] sm:$0x7] %v1058_v37  ;;  %v1166_v20 = vrot.slane %v1158_v9, 5  ;;  %1061 = vst [vmem:[%s2016_s5 + $0x8] sm:$0x7] %v1057_v5  ;;  %v1165_v8 = vrot.slane %v1157_v15, 5 }
 0x111   :  { %1172 = vst [vmem:[%s2016_s5] sm:$0x38] %v1164_v29  ;;  %1063 = vst [vmem:[%s2016_s5 + $0x18] sm:$0x7] %v1059_v26  ;;  %v1167_v53 = vrot.slane %v1159_v27, 5 }
 0x112   :  { %1174 = vst [vmem:[%s2016_s5 + $0x10] sm:$0x38] %v1166_v20  ;;  %1173 = vst [vmem:[%s2016_s5 + $0x8] sm:$0x38] %v1165_v8 }
 0x113   :  { %1175 = vst [vmem:[%s2016_s5 + $0x18] sm:$0x38] %v1167_v53 }

</bundles_post_ra>
